<compile_context>
chip_gen: v5e
topology: v5e:2x2
jax: 0.10.0
libtpu: 0.0.40
codegen_flags: <defaults>
</compile_context>

<pallas_src>
import math

import numpy as np
import jax
import jax.numpy as jnp
from jax.experimental import pallas as pl
from jax.experimental.pallas import tpu as pltpu


# ----------------------------------------------------------------------------
# Kernel (Bt images per grid step)
# ----------------------------------------------------------------------------
def attnpool_kernel(x_ref, pos0_ref, posr_ref, w0_ref, b0_ref, wkv_ref,
                    bkv_ref, wc_ref, bc_ref, hsum_ref, hexp_ref, o_ref):
    Bt, HW, E = x_ref.shape
    nH = hsum_ref.shape[1]

    # tokens (bf16 in HBM -> f32 once in VMEM)
    xf = x_ref[...].astype(jnp.float32)                         # (Bt, HW, E)
    t0 = jnp.mean(xf, axis=1) + pos0_ref[...]                   # (Bt, E) mean/CLS
    trb = (xf + posr_ref[...]).astype(jnp.bfloat16)             # (Bt, HW, E)
    trb_flat = trb.reshape(Bt * HW, E)                          # (Bt*HW, E)
    t0b = t0.astype(jnp.bfloat16)

    # fused K|V projection for all spatial tokens: one (Bt*HW, E)x(E, 2E) matmul
    kv = jnp.dot(trb_flat, wkv_ref[...],
                 preferred_element_type=jnp.float32) + bkv_ref[...]   # (Bt*HW, 2E)
    kr_flat = kv[:, :E]                                               # (Bt*HW, E)
    vr_flat = kv[:, E:]                                               # (Bt*HW, E)

    # fused Q|K|V projection for the Bt mean tokens (scale folded into Wq/bq)
    qkv0 = jnp.dot(t0b, w0_ref[...],
                   preferred_element_type=jnp.float32) + b0_ref[...]  # (Bt, 3E)
    q0 = qkv0[:, :E]
    k0 = qkv0[:, E:2 * E]
    v0 = qkv0[:, 2 * E:]

    # per-head logits via block-indicator matmul (no lane-splitting reshapes):
    # logits[b, l, h] = sum_{d in head h} q0[b, d] * k[b, l, d]
    q_b = jnp.broadcast_to(q0[:, None, :], (Bt, HW, E)).reshape(Bt * HW, E)
    l0 = jnp.dot(k0 * q0, hsum_ref[...],
                 preferred_element_type=jnp.float32)                  # (Bt, nH)
    lr = jnp.dot(kr_flat * q_b, hsum_ref[...],
                 preferred_element_type=jnp.float32).reshape(Bt, HW, nH)

    # softmax over the HW+1 tokens (f32); mean-token piece kept separate
    m = jnp.maximum(jnp.max(lr, axis=1), l0)                          # (Bt, nH)
    e0 = jnp.exp(l0 - m)                                              # (Bt, nH)
    er = jnp.exp(lr - m[:, None, :])                                  # (Bt, HW, nH)
    inv = pl.reciprocal(e0 + jnp.sum(er, axis=1), approx=True)        # (Bt, nH)
    p0 = (e0 * inv).astype(jnp.bfloat16)                              # (Bt, nH)
    pr_flat = (er * inv[:, None, :]).reshape(Bt * HW, nH).astype(jnp.bfloat16)

    # broadcast head-probabilities back to channels (bf16 MXU, f32 acc)
    p0e = jnp.dot(p0, hexp_ref[...],
                  preferred_element_type=jnp.float32)                 # (Bt, E)
    pre = jnp.dot(pr_flat, hexp_ref[...],
                  preferred_element_type=jnp.float32)                 # (Bt*HW, E)
    attn = p0e * v0 + jnp.sum((pre * vr_flat).reshape(Bt, HW, E), axis=1)

    # output projection (bf16 MXU) + bias
    out = jnp.dot(attn.astype(jnp.bfloat16), wc_ref[...],
                  preferred_element_type=jnp.float32) + bc_ref[...]   # (Bt, Do)
    o_ref[0] = out


# ----------------------------------------------------------------------------
# Wrapper
# ----------------------------------------------------------------------------
def attnpool2d_pallas(x_nchw, params, num_heads, *, max_block=8):
    N, C, H, W = x_nchw.shape
    E = C
    HW = H * W
    Do = params["wc"].shape[0]
    assert E % num_heads == 0
    assert params["pos"].shape == (HW + 1, E)
    hd = E // num_heads
    scale = 1.0 / math.sqrt(hd)

    # images per grid step: amortize the ~0.35us per-step overhead but keep
    # grid >= 2 whenever N >= 2 so both v7x TensorCores get work.
    Bt = 1 if N <= 1 else min(max_block, max(1, (N + 1) // 2))
    G = pl.cdiv(N, Bt)
    Npad = G * Bt

    # NCHW -> (N, HW, E) tokens; the bf16 downcast is fused into the same XLA
    # transpose pass so the kernel DMAs half the bytes per image.
    x_seq = jnp.transpose(x_nchw.reshape(N, C, HW), (0, 2, 1)).astype(jnp.bfloat16)
    if Npad != N:
        x_seq = jnp.pad(x_seq, ((0, Npad - N), (0, 0), (0, 0)))

    pos = params["pos"].astype(jnp.float32)
    pos0 = pos[0:1]                                    # (1, E)
    posr = pos[1:]                                     # (HW, E)

    # fused, pre-transposed bf16 weights (right-multiplication on the MXU);
    # the attention scale is folded into the q projection.
    wq_t = (params["wq"] * scale).T
    wk_t = params["wk"].T
    wv_t = params["wv"].T
    w0 = jnp.concatenate([wq_t, wk_t, wv_t], axis=1).astype(jnp.bfloat16)  # (E, 3E)
    b0 = jnp.concatenate([params["bq"] * scale, params["bk"], params["bv"]]
                         ).reshape(1, 3 * E).astype(jnp.float32)
    wkv = jnp.concatenate([wk_t, wv_t], axis=1).astype(jnp.bfloat16)       # (E, 2E)
    bkv = jnp.concatenate([params["bk"], params["bv"]]
                          ).reshape(1, 2 * E).astype(jnp.float32)
    wc = params["wc"].T.astype(jnp.bfloat16)                               # (E, Do)
    bc = params["bc"].reshape(1, Do).astype(jnp.float32)

    # head block-indicator matrices: hsum sums each head's hd lanes (f32, for
    # exact-ish logits), hexp broadcasts a per-head scalar back over its hd
    # lanes (0/1 exactly representable in bf16).
    ind = np.zeros((E, num_heads), np.float32)
    for h in range(num_heads):
        ind[h * hd:(h + 1) * hd, h] = 1.0
    hsum = jnp.asarray(ind, jnp.float32)               # (E, nH)
    hexp = jnp.asarray(ind.T, jnp.bfloat16)            # (nH, E)

    consts = [pos0, posr, w0, b0, wkv, bkv, wc, bc, hsum, hexp]

    def const_spec(a):
        zeros = (0,) * a.ndim
        return pl.BlockSpec(a.shape, lambda n, _z=zeros: _z)

    in_specs = [pl.BlockSpec((Bt, HW, E), lambda n: (n, 0, 0))]
    in_specs += [const_spec(a) for a in consts]

    out = pl.pallas_call(
        attnpool_kernel,
        out_shape=jax.ShapeDtypeStruct((G, Bt, Do), jnp.float32),
        grid=(G,),
        in_specs=in_specs,
        out_specs=pl.BlockSpec((1, Bt, Do), lambda n: (n, 0, 0)),
        compiler_params=pltpu.CompilerParams(
            dimension_semantics=("parallel",),
            vmem_limit_bytes=16 * 1024 * 1024),
    )(x_seq, *consts)
    return out.reshape(Npad, Do)[:N]                   # (N, Do)


# ----------------------------------------------------------------------------
# Deterministic parameter construction (shapes from the nn.Module __init__)
# ----------------------------------------------------------------------------
def init_attnpool_params(key, spacial_dim, embed_dim, num_heads, output_dim=None):
    output_dim = output_dim or embed_dim
    L = spacial_dim * spacial_dim + 1
    ks = jax.random.split(key, 9)
    bound = 1.0 / math.sqrt(embed_dim)

    def linear(kw, kb, out_f, in_f):
        w = jax.random.uniform(kw, (out_f, in_f), jnp.float32, -bound, bound)
        b = jax.random.uniform(kb, (out_f,), jnp.float32, -bound, bound)
        return w, b

    p = {"pos": jax.random.normal(ks[0], (L, embed_dim), jnp.float32)
               / math.sqrt(embed_dim)}
    p["wq"], p["bq"] = linear(ks[1], ks[2], embed_dim, embed_dim)
    p["wk"], p["bk"] = linear(ks[3], ks[4], embed_dim, embed_dim)
    p["wv"], p["bv"] = linear(ks[5], ks[6], embed_dim, embed_dim)
    p["wc"], p["bc"] = linear(ks[7], ks[8], output_dim, embed_dim)
    return p


# ----------------------------------------------------------------------------
# Plain-JAX reference (mirrors F.multi_head_attention_forward, then [0])
# ----------------------------------------------------------------------------
def attnpool2d_ref(x_nchw, p, num_heads):
    N, C, H, W = x_nchw.shape
    E = C
    HW = H * W
    hd = E // num_heads
    scale = 1.0 / math.sqrt(hd)

    x = jnp.transpose(x_nchw.reshape(N, C, HW), (2, 0, 1))              # (HW, N, E)
    x = jnp.concatenate([x.mean(axis=0, keepdims=True), x], axis=0)     # (L, N, E)
    x = x + p["pos"][:, None, :]

    q = (jnp.einsum("lne,fe->lnf", x[:1], p["wq"]) + p["bq"]) * scale   # (1, N, E)
    k = jnp.einsum("lne,fe->lnf", x, p["wk"]) + p["bk"]                 # (L, N, E)
    v = jnp.einsum("lne,fe->lnf", x, p["wv"]) + p["bv"]

    def split_heads(t):
        return t.reshape(t.shape[0], N, num_heads, hd).transpose(1, 2, 0, 3)

    qh, kh, vh = split_heads(q), split_heads(k), split_heads(v)         # (N,nH,*,hd)
    logits = jnp.einsum("bhqd,bhkd->bhqk", qh, kh)                      # (N,nH,1,L)
    probs = jax.nn.softmax(logits, axis=-1)
    o = jnp.einsum("bhqk,bhkd->bhqd", probs, vh)                        # (N,nH,1,hd)
    o = o.transpose(2, 0, 1, 3).reshape(1, N, E)[0]                     # (N, E)
    return jnp.einsum("ne,fe->nf", o, p["wc"]) + p["bc"]                # (N, Do)


# ----------------------------------------------------------------------------
if __name__ == "__main__":
    key = jax.random.PRNGKey(0)
    kx, kp = jax.random.split(key)

    spacial_dim, embed_dim, num_heads, output_dim = 8, 128, 4, 128
    params = init_attnpool_params(kp, spacial_dim, embed_dim, num_heads,
                                  output_dim)

    # batch=2 exercises Bt=1 / grid=2; batch=5 exercises Bt=3 / grid=2 with
    # one zero-padded image (sliced off).
    for batch in (2, 5):
        x = jax.random.normal(jax.random.fold_in(kx, batch),
                              (batch, embed_dim, spacial_dim, spacial_dim),
                              jnp.float32)                               # NCHW
        out = jax.block_until_ready(attnpool2d_pallas(x, params, num_heads))
        ref = attnpool2d_ref(x, params, num_heads)
        assert out.shape == (batch, output_dim), out.shape
        np.testing.assert_allclose(np.asarray(out), np.asarray(ref),
                                   rtol=2e-2, atol=2e-2)
    print("KERNEL_OK")
</pallas_src>

<mosaic_0001>
module attributes {stable_mosaic.version = 11 : i64} {
  func.func @attnpool_kernel(%arg0: i32, %arg1: memref<1x64x128xbf16, #tpu.memory_space<vmem>>, %arg2: memref<1x128xf32, #tpu.memory_space<vmem>>, %arg3: memref<64x128xf32, #tpu.memory_space<vmem>>, %arg4: memref<128x384xbf16, #tpu.memory_space<vmem>>, %arg5: memref<1x384xf32, #tpu.memory_space<vmem>>, %arg6: memref<128x256xbf16, #tpu.memory_space<vmem>>, %arg7: memref<1x256xf32, #tpu.memory_space<vmem>>, %arg8: memref<128x128xbf16, #tpu.memory_space<vmem>>, %arg9: memref<1x128xf32, #tpu.memory_space<vmem>>, %arg10: memref<128x4xf32, #tpu.memory_space<vmem>>, %arg11: memref<4x128xbf16, #tpu.memory_space<vmem>>, %arg12: memref<1x1x128xf32, #tpu.memory_space<vmem>>) attributes {dimension_semantics = [#tpu.dimension_semantics<parallel>], iteration_bounds = array<i64: 2>, scalar_prefetch = 0 : i64, scratch_operands = 0 : i64, tpu.core_type = #tpu.core_type<tc>, window_params = [{transform_indices = @transform_0, window_bounds = array<i64: 1, 64, 128>}, {pipeline_mode = #tpu.pipeline_mode<synchronous>, transform_indices = @transform_1, window_bounds = array<i64: 1, 128>}, {pipeline_mode = #tpu.pipeline_mode<synchronous>, transform_indices = @transform_2, window_bounds = array<i64: 64, 128>}, {pipeline_mode = #tpu.pipeline_mode<synchronous>, transform_indices = @transform_3, window_bounds = array<i64: 128, 384>}, {pipeline_mode = #tpu.pipeline_mode<synchronous>, transform_indices = @transform_4, window_bounds = array<i64: 1, 384>}, {pipeline_mode = #tpu.pipeline_mode<synchronous>, transform_indices = @transform_5, window_bounds = array<i64: 128, 256>}, {pipeline_mode = #tpu.pipeline_mode<synchronous>, transform_indices = @transform_6, window_bounds = array<i64: 1, 256>}, {pipeline_mode = #tpu.pipeline_mode<synchronous>, transform_indices = @transform_7, window_bounds = array<i64: 128, 128>}, {pipeline_mode = #tpu.pipeline_mode<synchronous>, transform_indices = @transform_8, window_bounds = array<i64: 1, 128>}, {pipeline_mode = #tpu.pipeline_mode<synchronous>, transform_indices = @transform_9, window_bounds = array<i64: 128, 4>}, {pipeline_mode = #tpu.pipeline_mode<synchronous>, transform_indices = @transform_10, window_bounds = array<i64: 4, 128>}, {transform_indices = @transform_11, window_bounds = array<i64: 1, 1, 128>}]} {
    %c0 = arith.constant 0 : index
    %c0_0 = arith.constant 0 : index
    %c0_1 = arith.constant 0 : index
    %0 = vector.load %arg1[%c0, %c0_0, %c0_1] : memref<1x64x128xbf16, #tpu.memory_space<vmem>>, vector<1x64x128xbf16>
    %1 = arith.extf %0 : vector<1x64x128xbf16> to vector<1x64x128xf32>
    %cst = arith.constant dense<0.000000e+00> : vector<1x128xf32>
    %2 = vector.multi_reduction <add>, %1, %cst [1] : vector<1x64x128xf32> to vector<1x128xf32>
    %cst_2 = arith.constant 6.400000e+01 : f32
    %3 = vector.broadcast %cst_2 : f32 to vector<1x128xf32>
    %4 = arith.divf %2, %3 : vector<1x128xf32>
    %c0_3 = arith.constant 0 : index
    %c0_4 = arith.constant 0 : index
    %5 = vector.load %arg2[%c0_3, %c0_4] : memref<1x128xf32, #tpu.memory_space<vmem>>, vector<1x128xf32>
    %6 = arith.addf %4, %5 : vector<1x128xf32>
    %c0_5 = arith.constant 0 : index
    %c0_6 = arith.constant 0 : index
    %7 = vector.load %arg3[%c0_5, %c0_6] : memref<64x128xf32, #tpu.memory_space<vmem>>, vector<64x128xf32>
    %8 = vector.shape_cast %7 : vector<64x128xf32> to vector<1x64x128xf32>
    %9 = arith.addf %1, %8 : vector<1x64x128xf32>
    %10 = arith.truncf %9 : vector<1x64x128xf32> to vector<1x64x128xbf16>
    %11 = vector.shape_cast %10 : vector<1x64x128xbf16> to vector<64x128xbf16>
    %12 = arith.truncf %6 : vector<1x128xf32> to vector<1x128xbf16>
    %c0_7 = arith.constant 0 : index
    %c0_8 = arith.constant 0 : index
    %13 = vector.load %arg6[%c0_7, %c0_8] : memref<128x256xbf16, #tpu.memory_space<vmem>>, vector<128x256xbf16>
    %cst_9 = arith.constant dense<0.000000e+00> : vector<64x256xf32>
    %14 = tpu.matmul %11, %13, %cst_9 {dimension_numbers = #tpu.dot_dimension_numbers<[1], [0], [0], [1], [0, 0, 1, 1], [], []>} : vector<64x128xbf16>, vector<128x256xbf16>, vector<64x256xf32> -> vector<64x256xf32>
    %c0_10 = arith.constant 0 : index
    %c0_11 = arith.constant 0 : index
    %15 = vector.load %arg7[%c0_10, %c0_11] : memref<1x256xf32, #tpu.memory_space<vmem>>, vector<1x256xf32>
    %16 = vector.broadcast %15 : vector<1x256xf32> to vector<64x256xf32>
    %17 = arith.addf %14, %16 : vector<64x256xf32>
    %18 = vector.extract_strided_slice %17 {offsets = [0, 0], sizes = [64, 128], strides = [1, 1]} : vector<64x256xf32> to vector<64x128xf32>
    %19 = vector.extract_strided_slice %17 {offsets = [0, 128], sizes = [64, 128], strides = [1, 1]} : vector<64x256xf32> to vector<64x128xf32>
    %c0_12 = arith.constant 0 : index
    %c0_13 = arith.constant 0 : index
    %20 = vector.load %arg4[%c0_12, %c0_13] : memref<128x384xbf16, #tpu.memory_space<vmem>>, vector<128x384xbf16>
    %cst_14 = arith.constant dense<0.000000e+00> : vector<1x384xf32>
    %21 = tpu.matmul %12, %20, %cst_14 {dimension_numbers = #tpu.dot_dimension_numbers<[1], [0], [0], [1], [0, 0, 1, 1], [], []>} : vector<1x128xbf16>, vector<128x384xbf16>, vector<1x384xf32> -> vector<1x384xf32>
    %c0_15 = arith.constant 0 : index
    %c0_16 = arith.constant 0 : index
    %22 = vector.load %arg5[%c0_15, %c0_16] : memref<1x384xf32, #tpu.memory_space<vmem>>, vector<1x384xf32>
    %23 = arith.addf %21, %22 : vector<1x384xf32>
    %24 = vector.extract_strided_slice %23 {offsets = [0, 0], sizes = [1, 128], strides = [1, 1]} : vector<1x384xf32> to vector<1x128xf32>
    %25 = vector.extract_strided_slice %23 {offsets = [0, 128], sizes = [1, 128], strides = [1, 1]} : vector<1x384xf32> to vector<1x128xf32>
    %26 = vector.extract_strided_slice %23 {offsets = [0, 256], sizes = [1, 128], strides = [1, 1]} : vector<1x384xf32> to vector<1x128xf32>
    %27 = vector.shape_cast %24 : vector<1x128xf32> to vector<1x1x128xf32>
    %28 = vector.shape_cast %27 : vector<1x1x128xf32> to vector<1x1x128xf32>
    %29 = vector.broadcast %28 : vector<1x1x128xf32> to vector<1x64x128xf32>
    %30 = vector.shape_cast %29 : vector<1x64x128xf32> to vector<64x128xf32>
    %31 = arith.mulf %25, %24 : vector<1x128xf32>
    %c0_17 = arith.constant 0 : index
    %c0_18 = arith.constant 0 : index
    %32 = vector.load %arg10[%c0_17, %c0_18] : memref<128x4xf32, #tpu.memory_space<vmem>>, vector<128x4xf32>
    %cst_19 = arith.constant dense<0.000000e+00> : vector<1x4xf32>
    %33 = tpu.matmul %31, %32, %cst_19 {dimension_numbers = #tpu.dot_dimension_numbers<[1], [0], [0], [1], [0, 0, 1, 1], [], []>} : vector<1x128xf32>, vector<128x4xf32>, vector<1x4xf32> -> vector<1x4xf32>
    %34 = arith.mulf %18, %30 : vector<64x128xf32>
    %c0_20 = arith.constant 0 : index
    %c0_21 = arith.constant 0 : index
    %35 = vector.load %arg10[%c0_20, %c0_21] : memref<128x4xf32, #tpu.memory_space<vmem>>, vector<128x4xf32>
    %cst_22 = arith.constant dense<0.000000e+00> : vector<64x4xf32>
    %36 = tpu.matmul %34, %35, %cst_22 {dimension_numbers = #tpu.dot_dimension_numbers<[1], [0], [0], [1], [0, 0, 1, 1], [], []>} : vector<64x128xf32>, vector<128x4xf32>, vector<64x4xf32> -> vector<64x4xf32>
    %37 = vector.shape_cast %36 : vector<64x4xf32> to vector<1x64x4xf32>
    %cst_23 = arith.constant dense<0xFF800000> : vector<1x4xf32>
    %38 = vector.multi_reduction <maximumf>, %37, %cst_23 [1] : vector<1x64x4xf32> to vector<1x4xf32>
    %39 = arith.maximumf %38, %33 : vector<1x4xf32>
    %40 = arith.subf %33, %39 : vector<1x4xf32>
    %41 = math.exp %40 : vector<1x4xf32>
    %42 = vector.shape_cast %39 : vector<1x4xf32> to vector<1x1x4xf32>
    %43 = vector.broadcast %42 : vector<1x1x4xf32> to vector<1x64x4xf32>
    %44 = arith.subf %37, %43 : vector<1x64x4xf32>
    %45 = math.exp %44 : vector<1x64x4xf32>
    %cst_24 = arith.constant dense<0.000000e+00> : vector<1x4xf32>
    %46 = vector.multi_reduction <add>, %45, %cst_24 [1] : vector<1x64x4xf32> to vector<1x4xf32>
    %47 = arith.addf %41, %46 : vector<1x4xf32>
    %48 = tpu.reciprocal %47 {approx = true} : vector<1x4xf32> -> vector<1x4xf32>
    %49 = arith.mulf %41, %48 : vector<1x4xf32>
    %50 = arith.truncf %49 : vector<1x4xf32> to vector<1x4xbf16>
    %51 = vector.shape_cast %48 : vector<1x4xf32> to vector<1x1x4xf32>
    %52 = vector.broadcast %51 : vector<1x1x4xf32> to vector<1x64x4xf32>
    %53 = arith.mulf %45, %52 : vector<1x64x4xf32>
    %54 = vector.shape_cast %53 : vector<1x64x4xf32> to vector<64x4xf32>
    %55 = arith.truncf %54 : vector<64x4xf32> to vector<64x4xbf16>
    %c0_25 = arith.constant 0 : index
    %c0_26 = arith.constant 0 : index
    %56 = vector.load %arg11[%c0_25, %c0_26] : memref<4x128xbf16, #tpu.memory_space<vmem>>, vector<4x128xbf16>
    %cst_27 = arith.constant dense<0.000000e+00> : vector<1x128xf32>
    %57 = tpu.matmul %50, %56, %cst_27 {dimension_numbers = #tpu.dot_dimension_numbers<[1], [0], [0], [1], [0, 0, 1, 1], [], []>} : vector<1x4xbf16>, vector<4x128xbf16>, vector<1x128xf32> -> vector<1x128xf32>
    %c0_28 = arith.constant 0 : index
    %c0_29 = arith.constant 0 : index
    %58 = vector.load %arg11[%c0_28, %c0_29] : memref<4x128xbf16, #tpu.memory_space<vmem>>, vector<4x128xbf16>
    %cst_30 = arith.constant dense<0.000000e+00> : vector<64x128xf32>
    %59 = tpu.matmul %55, %58, %cst_30 {dimension_numbers = #tpu.dot_dimension_numbers<[1], [0], [0], [1], [0, 0, 1, 1], [], []>} : vector<64x4xbf16>, vector<4x128xbf16>, vector<64x128xf32> -> vector<64x128xf32>
    %60 = arith.mulf %57, %26 : vector<1x128xf32>
    %61 = arith.mulf %59, %19 : vector<64x128xf32>
    %62 = vector.shape_cast %61 : vector<64x128xf32> to vector<1x64x128xf32>
    %cst_31 = arith.constant dense<0.000000e+00> : vector<1x128xf32>
    %63 = vector.multi_reduction <add>, %62, %cst_31 [1] : vector<1x64x128xf32> to vector<1x128xf32>
    %64 = arith.addf %60, %63 : vector<1x128xf32>
    %65 = arith.truncf %64 : vector<1x128xf32> to vector<1x128xbf16>
    %c0_32 = arith.constant 0 : index
    %c0_33 = arith.constant 0 : index
    %66 = vector.load %arg8[%c0_32, %c0_33] : memref<128x128xbf16, #tpu.memory_space<vmem>>, vector<128x128xbf16>
    %cst_34 = arith.constant dense<0.000000e+00> : vector<1x128xf32>
    %67 = tpu.matmul %65, %66, %cst_34 {dimension_numbers = #tpu.dot_dimension_numbers<[1], [0], [0], [1], [0, 0, 1, 1], [], []>} : vector<1x128xbf16>, vector<128x128xbf16>, vector<1x128xf32> -> vector<1x128xf32>
    %c0_35 = arith.constant 0 : index
    %c0_36 = arith.constant 0 : index
    %68 = vector.load %arg9[%c0_35, %c0_36] : memref<1x128xf32, #tpu.memory_space<vmem>>, vector<1x128xf32>
    %69 = arith.addf %67, %68 : vector<1x128xf32>
    %c0_37 = arith.constant 0 : index
    %c0_38 = arith.constant 0 : index
    %c0_39 = arith.constant 0 : index
    %70 = vector.load %arg12[%c0_37, %c0_38, %c0_39] : memref<1x1x128xf32, #tpu.memory_space<vmem>>, vector<1x1x128xf32>
    %71 = vector.shape_cast %70 : vector<1x1x128xf32> to vector<1x128xf32>
    %72 = vector.shape_cast %69 : vector<1x128xf32> to vector<1x1x128xf32>
    tpu.vector_store %arg12[%c0_37, %c0_38, %c0_39], %72 {strides = array<i32>} : memref<1x1x128xf32, #tpu.memory_space<vmem>>, vector<1x1x128xf32>,
    return
  }
  func.func @transform_0(%arg0: i32) -> (i32, i32, i32) {
    %c0_i32 = arith.constant 0 : i32
    %c0_i32_0 = arith.constant 0 : i32
    %c0_i32_1 = arith.constant 0 : i32
    return %arg0, %c0_i32, %c0_i32_0 : i32, i32, i32
  }
  func.func @transform_1(%arg0: i32) -> (i32, i32) {
    %c0_i32 = arith.constant 0 : i32
    %c0_i32_0 = arith.constant 0 : i32
    %c0_i32_1 = arith.constant 0 : i32
    return %c0_i32, %c0_i32_0 : i32, i32
  }
  func.func @transform_2(%arg0: i32) -> (i32, i32) {
    %c0_i32 = arith.constant 0 : i32
    %c0_i32_0 = arith.constant 0 : i32
    %c0_i32_1 = arith.constant 0 : i32
    return %c0_i32, %c0_i32_0 : i32, i32
  }
  func.func @transform_3(%arg0: i32) -> (i32, i32) {
    %c0_i32 = arith.constant 0 : i32
    %c0_i32_0 = arith.constant 0 : i32
    %c0_i32_1 = arith.constant 0 : i32
    return %c0_i32, %c0_i32_0 : i32, i32
  }
  func.func @transform_4(%arg0: i32) -> (i32, i32) {
    %c0_i32 = arith.constant 0 : i32
    %c0_i32_0 = arith.constant 0 : i32
    %c0_i32_1 = arith.constant 0 : i32
    return %c0_i32, %c0_i32_0 : i32, i32
  }
  func.func @transform_5(%arg0: i32) -> (i32, i32) {
    %c0_i32 = arith.constant 0 : i32
    %c0_i32_0 = arith.constant 0 : i32
    %c0_i32_1 = arith.constant 0 : i32
    return %c0_i32, %c0_i32_0 : i32, i32
  }
  func.func @transform_6(%arg0: i32) -> (i32, i32) {
    %c0_i32 = arith.constant 0 : i32
    %c0_i32_0 = arith.constant 0 : i32
    %c0_i32_1 = arith.constant 0 : i32
    return %c0_i32, %c0_i32_0 : i32, i32
  }
  func.func @transform_7(%arg0: i32) -> (i32, i32) {
    %c0_i32 = arith.constant 0 : i32
    %c0_i32_0 = arith.constant 0 : i32
    %c0_i32_1 = arith.constant 0 : i32
    return %c0_i32, %c0_i32_0 : i32, i32
  }
  func.func @transform_8(%arg0: i32) -> (i32, i32) {
    %c0_i32 = arith.constant 0 : i32
    %c0_i32_0 = arith.constant 0 : i32
    %c0_i32_1 = arith.constant 0 : i32
    return %c0_i32, %c0_i32_0 : i32, i32
  }
  func.func @transform_9(%arg0: i32) -> (i32, i32) {
    %c0_i32 = arith.constant 0 : i32
    %c0_i32_0 = arith.constant 0 : i32
    %c0_i32_1 = arith.constant 0 : i32
    return %c0_i32, %c0_i32_0 : i32, i32
  }
  func.func @transform_10(%arg0: i32) -> (i32, i32) {
    %c0_i32 = arith.constant 0 : i32
    %c0_i32_0 = arith.constant 0 : i32
    %c0_i32_1 = arith.constant 0 : i32
    return %c0_i32, %c0_i32_0 : i32, i32
  }
  func.func @transform_11(%arg0: i32) -> (i32, i32, i32) {
    %c0_i32 = arith.constant 0 : i32
    %c0_i32_0 = arith.constant 0 : i32
    %c0_i32_1 = arith.constant 0 : i32
    return %arg0, %c0_i32, %c0_i32_0 : i32, i32, i32
  }
}

</mosaic_0001>

<bundles_post_ra>
// kernel: tpu_custom_call.1
= control target key start
LH: loop header
LB: loop body
LE: loop exit
PB: predicated region body
PF: predicated region fallthrough
CT: control target
= control target key end

     0   :  { %s2618_s0 = inlined_call_operand.hbm [shape: bf16[2,64,128], index: 0, kind: input, shape index: {}]   ;;  %s2619_s1 = inlined_call_operand.hbm [shape: f32[1,128], index: 1, kind: input, shape index: {}]   ;;  %s2620_s2 = inlined_call_operand.hbm [shape: f32[64,128], index: 2, kind: input, shape index: {}]   ;;  %s2621_s3 = inlined_call_operand.hbm [shape: bf16[128,384], index: 3, kind: input, shape index: {}]   ;;  %s2622_s4 = inlined_call_operand.vmem [shape: f32[1,384], index: 4, kind: input, shape index: {}]   ;;  %s2623_s5 = inlined_call_operand.vmem [shape: bf16[128,256], index: 5, kind: input, shape index: {}]   ;;  %s2624_s6 = inlined_call_operand.vmem [shape: f32[1,256], index: 6, kind: input, shape index: {}]   ;;  %s2625_s7 = inlined_call_operand.hbm [shape: bf16[128,128], index: 7, kind: input, shape index: {}]   ;;  %s2626_s8 = inlined_call_operand.hbm [shape: f32[1,128], index: 8, kind: input, shape index: {}]   ;;  %s2627_s9 = inlined_call_operand.vmem [shape: f32[128,4], index: 9, kind: input, shape index: {}]   ;;  %s2628_s10 = inlined_call_operand.vmem [shape: bf16[4,128], index: 10, kind: input, shape index: {}]   ;;  %s2629_s11 = inlined_call_operand.hbm [shape: f32[2,1,128], index: 11, kind: output, shape index: {}]  }
   0x1   :  { %2633 = sst [smem:[#allocation19_spill]] %s2619_s1 }
   0x2   :  { %2634 = sst [smem:[#allocation20_spill]] %s2620_s2 }
   0x3   :  { %2635 = sst [smem:[#allocation21_spill]] %s2621_s3 }
   0x4   :  { %2636 = sst [smem:[#allocation22_spill]] %s2625_s7 }
   0x5   :  { %2637 = sst [smem:[#allocation23_spill]] %s2629_s11 }
   0x6   :  { %16 = vsyncpa [#allocation3], 0 }
   0x7   :  { %18 = vsyncpa [#allocation3 + $0x1], 0 }
   0x8   :  { %19 = vsyncpa [#allocation6], 0 }
   0x9   :  { %20 = vsyncpa [#allocation9], 0 }
   0xa   :  { %21 = vsyncpa [#allocation12], 0 }
   0xb   :  { %22 = vsyncpa [#allocation4], 0 }
   0xc   :  { %24 = vsyncpa [#allocation4 + $0x1], 0  ;;  %s2160_s17 = smov 0   ;;  %s2162_s18 = smov 0  }
   0xd   :  { %s2164_s19 = smov 0   ;;  %s2166_s20 = smov 0  }
   0xe LB: > { %s2638_s1 = sld [smem:[#allocation19_spill]]  ;;  %s2184_s24 = sadd.s32 4294967295, %s2086_s20   ;;  %s2086_s20 = sphi %s2166_s20, %s2655_s20   ;;  %s2082_s19 = sphi %s2164_s19, %s2654_s19   ;;  %s2078_s18 = sphi %s2162_s18, %s2653_s18   ;;  %s2074_s17 = sphi %s2160_s17, %s2652_s17  }
   0xf   : > { %p1410_p0 = scmp.ge.s32.totalorder %s2086_s20, 1  ;;  %p51_p1 = scmp.eq.s32.totalorder %s2184_s24, 0 }
  0x10   : > { %p297_p2 = scmp.lt.s32.totalorder %s2086_s20, 3  ;;  %s2088_s26 = smov [#allocation5]  }
  0x11   : > { %s311_s27 = sshll.u32 %s2088_s26, 4  ;;  %s2640_s3 = sld [smem:[#allocation21_spill]]  ;;  %s312_s27 = int_to_ptr.vmem [resolvable:$true] %s311_s27 }
  0x12   : > { %p2189_p3 = pnand %p1410_p0, %p297_p2  ;;  %s2089_s13 = smov [#allocation8]  }
  0x13   : > { %s336_s14 = sshll.u32 %s2089_s13, 4  ;;  %s2090_s15 = smov 192   ;;  %s337_s14 = int_to_ptr.vmem [resolvable:$true] %s336_s14 }
  0x14   : > { %s309_s23 = sshll.u32 %s2638_s1, 4  ;;  %p1726_p5 = pneg %p2189_p3  ;;  %s310_s23 = int_to_ptr.hbm [resolvable:$true] %s309_s23 }
  0x15   : > { %s2091_s16 = smov 12   ;;  %s2642_s2 = sld [smem:[#allocation20_spill]] }
  0x16   : > { %p2201_p6 = pnand %p1726_p5, %p51_p1  ;;  %s2092_s28 = smov [#allocation7]  }
  0x17   : > { %s334_s30 = sshll.u32 %s2640_s3, 4  ;;  %s322_s29 = sshll.u32 %s2092_s28, 4  ;;  %s335_s30 = int_to_ptr.hbm [resolvable:$true] %s334_s30  ;;  %s323_s29 = int_to_ptr.vmem [resolvable:$true] %s322_s29 }
  0x18   : > { %1729 = dma.hbm_to_vmem [thread:$0]  (!%p2201_p6), %s310_s23, 16, %s312_s27, [#allocation6]  }
  0x19   : > { %1735 = dma.hbm_to_vmem [thread:$0]  (!%p2201_p6), %s335_s30, 3072, %s337_s14, [#allocation9], %s2090_s15, %s2090_s15, %s2091_s16  }
  0x1a   : > { %s2643_s7 = sld [smem:[#allocation22_spill]]  ;;  %s2093_s11 = smov 128  }
  0x1b   : > { %s320_s26 = sshll.u32 %s2642_s2, 4  ;;  %s2094_s23 = smov 8   ;;  %s321_s26 = int_to_ptr.hbm [resolvable:$true] %s320_s26 }
  0x1c   : > { %1732 = dma.hbm_to_vmem [thread:$0]  (!%p2201_p6), %s321_s26, 1024, %s323_s29, [#allocation6], %s2093_s11, %s2093_s11, %s2094_s23  }
  0x1d   : > { %s2095_s27 = smov [#allocation10]   ;;  %s2631_s14 = smov 64  }
  0x1e   : > { %s359_s30 = sshll.u32 %s2095_s27, 4  ;;  %s2632_s1 = smov 4   ;;  %s360_s30 = int_to_ptr.vmem [resolvable:$true] %s359_s30 }
  0x1f   : > { %s372_s15 = sshll.u32 %s2626_s8, 4  ;;  %s2098_s16 = smov [#allocation11]   ;;  %s373_s15 = int_to_ptr.hbm [resolvable:$true] %s372_s15 }
  0x20   : > { %s357_s13 = sshll.u32 %s2643_s7, 4  ;;  %s374_s21 = sshll.u32 %s2098_s16, 4  ;;  %s358_s13 = int_to_ptr.hbm [resolvable:$true] %s357_s13  ;;  %s375_s21 = int_to_ptr.vmem [resolvable:$true] %s374_s21 }
  0x21   : > { %1738 = dma.hbm_to_vmem [thread:$0]  (!%p2201_p6), %s358_s13, 1024, %s360_s30, [#allocation9], %s2631_s14, %s2631_s14, %s2632_s1  }
  0x22   : > { %1741 = dma.hbm_to_vmem [thread:$0]  (!%p2201_p6), %s373_s15, 16, %s375_s21, [#allocation12]  }
  0x23   : > { %s1409_s22 = sadd.s32 4294967294, %s2086_s20   ;;  %s2229_s26 = sadd.s32 1, %s2086_s20  }
  0x24   : > { %s37_s28 = sadd.s32 1, %s2082_s19  ;;  %s34_s29 = ssub.s32 %s2086_s20, %s2229_s26 }
  0x25   : > { %p44_p7 = scmp.ne.s32.totalorder %s2082_s19, %s2078_s18  ;;  %p35_p8 = scmp.eq.s32.totalorder %s34_s29, 0 }
  0x26   : > { %p45_p9 = scmp.eq.s32.totalorder %s2086_s20, 0  ;;  %p50_p10 = scmp.ne.s32.totalorder %s2078_s18, %s2074_s17 }
  0x27   : > { %p284_p11 = scmp.eq.s32.totalorder %s2184_s24, 1  ;;  %p290_p0 = scmp.eq.s32.totalorder %s1409_s22, 1 }
  0x28   : > { %s2241_s13 = scalar_select %p35_p8, %s2082_s19, %s37_s28  }
  0x29   : > { %p2245_p12 = por %p51_p1, %p50_p10  ;;  %p2249_p13 = por %p284_p11, %p44_p7 }
  0x2a   : > { %p46_p2 = por %p45_p9, %p44_p7  ;;  %s391_s27 = sand.u32 1, %s2082_s19  }
  0x2b   : > { %p2254_p5 = por %p290_p0, %p50_p10  ;;  %p1755_p6 = scmp.lt.s32.totalorder %s2086_s20, 2 }
  0x2c   : > { %s1417_s3 = sshll.u32 %s391_s27, 5  ;;  %s1626_s11 = sshll.u32 %s2086_s20, 5 }
  0x2d   : > { %s400_s21 = scalar_lea.hbm %s2618_s0, %s1626_s11  ;;  %s395_s29 = scalar_lea.vmem [#allocation2], %s1417_s3 }
  0x2e   : > { %s401_s28 = sshll.u32 %s400_s21, 4  ;;  %s403_s14 = sshll.u32 %s395_s29, 4  ;;  %s402_s28 = int_to_ptr.hbm [resolvable:$true] %s401_s28  ;;  %s404_s14 = int_to_ptr.vmem [resolvable:$true] %s403_s14 }
  0x2f   : > { %p2263_p8 = pnand %p1755_p6, %p46_p2  ;;  %s392_s1 = scalar_lea.sflag [#allocation3], %s391_s27 }
  0x30   : > { %s1978_s2 = sshra.s32 %s402_s28, 4  ;;  %s1985_s3 = scalar_lea.hbm %s2618_s0, 64  ;;  %s1979_s2 = int_to_ptr.hbm [resolvable:$true] %s1978_s2 }
  0x31   : > { %s1980_s7 = scalar_lea.hbm %s1979_s2, 32  ;;  %p1982_p9 = pneg %p2263_p8 }
  0x32   : > { %p1981_p7 = scmp.ne.s32.totalorder %s1979_s2, %s1980_s7  ;;  %p1986_p0 = scmp.lt.s32.totalorder %s1979_s2, %s2618_s0 }
  0x33   : > { %p1987_p2 = scmp.lt.s32.totalorder %s1985_s3, %s1980_s7 }
  0x34   : > { %p1983_p10 = pnand %p1982_p9, %p1981_p7 }
  0x35   : > { %p1988_p6 = por %p1987_p2, %p1986_p0 }
  0x36   : > { %p1984_p11 = pneg %p1983_p10 }
  0x38   : > { %p1989_p4 = pnand %p1988_p6, %p1984_p11 }
  0x3a   : > { %1992 = shalt.err (!%p1989_p4)
}
  0x3b   : > { %s2648_s27 = smov 4   ;;  %s2649_s29 = smov 64  }
  0x3c   : > { %1745 = dma.hbm_to_vmem [thread:$0]  (!%p2263_p8), %s402_s28, 512, %s404_s14, %s392_s1, %s2649_s29, %s2649_s29, %s2648_s27  }
  0x3d   : > { %415 = sbr.rel (%p2189_p3) target bundleno = 853 (0x355), region = 64  ;;  %s2283_s11 = sand.u32 (!%p2189_p3), 1, %s2078_s18  }
  0x3e   : > { %s1421_s2 = sshll.u32 (!%p2189_p3), %s2283_s11, 5  ;;  %s418_s7 = scalar_lea.sflag (!%p2189_p3), [#allocation3], %s2283_s11 }
  0x3f   : > { %s2287_s15 = scalar_lea.vmem (!%p2189_p3), [#allocation2], %s1421_s2 }
  0x42   : > { %2053 = dma.done.wait (%p2245_p12), %s418_s7, 512  }
  0x43   : > { %2055 = vsyncadd (%p2245_p12), %s418_s7, 4294966784 }
  0x44   : > { %2057 = dma.done.wait (%p51_p1), [#allocation6], 1040  }
  0x45   : > { %2059 = vsyncadd (%p51_p1), [#allocation6], 4294966256 }
  0x46   : > { %2061 = dma.done.wait (%p51_p1), [#allocation9], 4096  }
  0x47   : > { %2063 = vsyncadd (%p51_p1), [#allocation9], 4294963200 }
  0x48   : > { %2065 = dma.done.wait (%p51_p1), [#allocation12], 16  }
  0x49   : > { %2067 = vsyncadd (%p51_p1), [#allocation12], 4294967280  ;;  %v1485_v0 = vld [vmem:[%s2623_s5 + $0x70] sm:$0xf]  ;;  %v1642_v1 = vld [vmem:[%s2623_s5 + $0x74] sm:$0xf0] }
  0x4a   : > { %v1577_v2 = vld [vmem:[#allocation8 + $0xa8] sm:$0xf]  ;;  %v1486_v3 = vor.u32 %v1642_v1, %v1485_v0  ;;  %v1665_v4 = vld [vmem:[#allocation8 + $0xb0] sm:$0xf0]  ;;  %v1477_v5 = vld [vmem:[%s2623_s5 + $0x60] sm:$0xf] }
  0x4b   : > { %v1640_v6 = vld [vmem:[%s2623_s5 + $0x64] sm:$0xf0]  ;;  %v1578_v7 = vor.u32 %v1665_v4, %v1577_v2  ;;  %v1565_v8 = vld [vmem:[#allocation8 + $0x90] sm:$0xf]  ;;  %v1662_v9 = vld [vmem:[#allocation8 + $0x98] sm:$0xf0] }
  0x4c   : > { %676 = vmatpush.bf16.msra.mxu0 %v1486_v3  ;;  %1694 = vmatpush.bf16.msra.mxu3 %v1486_v3  ;;  %v1478_v10 = vor.u32 %v1640_v6, %v1477_v5  ;;  %v1566_v11 = vor.u32 %v1662_v9, %v1565_v8  ;;  %v1469_v12 = vld [vmem:[%s2623_s5 + $0x50] sm:$0xf]  ;;  %v1638_v13 = vld [vmem:[%s2623_s5 + $0x54] sm:$0xf0]  ;;  %v1659_v15 = vld [vmem:[#allocation8 + $0x80] sm:$0xf0] }
  0x4d   : > { %902 = vmatpush.bf16.msra.mxu2 %v1578_v7  ;;  %v1553_v14 = vld [vmem:[#allocation8 + $0x78] sm:$0xf]  ;;  %v1470_v16 = vor.u32 %v1638_v13, %v1469_v12  ;;  %v1461_v18 = vld [vmem:[%s2623_s5 + $0x40] sm:$0xf]  ;;  %v1636_v19 = vld [vmem:[%s2623_s5 + $0x44] sm:$0xf0] }
  0x4e   : > { %v1554_v17 = vor.u32 %v1659_v15, %v1553_v14  ;;  %v1541_v20 = vld [vmem:[#allocation8 + $0x60] sm:$0xf]  ;;  %v1656_v21 = vld [vmem:[#allocation8 + $0x68] sm:$0xf0]  ;;  %v1462_v23 = vor.u32 %v1636_v19, %v1461_v18  ;;  %v2099_v27 = vmov 64.0   ;;  %v2351_v48 = vld [vmem:[%s2287_s15 + $0x18] sm:$0xff]  }
  0x4f   : > { %v1676_v22 = vld [vmem:[%s2287_s15] sm:$0xff]   ;;  %v2331_v26 = vld [vmem:[%s2287_s15 + $0x8] sm:$0xff]   ;;  %1806 = vrcp.f32 %v2099_v27  ;;  %v1542_v28 = vor.u32 %v1656_v21, %v1541_v20  ;;  %v1453_v29 = vld [vmem:[%s2623_s5 + $0x30] sm:$0xf]  ;;  %v1689_v58 = vunpack.c.l.bf16 %v2351_v48  ;;  %v1690_v2 = vunpack.c.h.bf16 %v2351_v48  ;;  %s2650_s16 = sld [smem:[#allocation23_spill]]  ;;  %s484_s27 = scalar_lea.vmem [#allocation13], %s2283_s11 }
  0x50   : > { %677 = vmatpush.bf16.msra.mxu0 %v1478_v10  ;;  %1695 = vmatpush.bf16.msra.mxu3 %v1478_v10  ;;  %v1677_v24 = vunpack.c.l.bf16 %v1676_v22  ;;  %v1678_v25 = vunpack.c.h.bf16 %v1676_v22  ;;  %v1634_v30 = vld [vmem:[%s2623_s5 + $0x34] sm:$0xf0]  ;;  %v1681_v31 = vunpack.c.l.bf16 %v2331_v26  ;;  %v1692_v32 = vld [vmem:[%s2287_s15 + $0x10] sm:$0xff]   ;;  %v1529_v33 = vld [vmem:[#allocation8 + $0x48] sm:$0xf]  ;;  %v1682_v36 = vunpack.c.h.bf16 %v2331_v26  ;;  %s1293_s29 = sshll.u32 %s484_s27, 4  ;;  %s1294_s29 = int_to_ptr.vmem [resolvable:$true] %s1293_s29 }
  0x51   : > { %903 = vmatpush.bf16.msra.mxu2 %v1566_v11  ;;  %v1653_v34 = vld [vmem:[#allocation8 + $0x50] sm:$0xf0]  ;;  %v525_v37 = vld [vmem:[#allocation7] sm:$0xff]  ;;  %v1454_v38 = vor.u32 %v1634_v30, %v1453_v29  ;;  %v526_v40 = vld [vmem:[#allocation7 + $0x8] sm:$0xff]  ;;  %v1685_v41 = vunpack.c.l.bf16 %v1692_v32  ;;  %v1686_v47 = vunpack.c.h.bf16 %v1692_v32  ;;  %vm1028_vm1 = vcmask 31744   ;;  %s1283_s2 = scalar_lea.sflag [#allocation4], %s2283_s11 }
  0x52   : > { %v502_v35 = vadd.f32 %v1678_v25, %v1677_v24  ;;  %v529_v42 = vld [vmem:[#allocation7 + $0x20] sm:$0xff]  ;;  %v530_v43 = vld [vmem:[#allocation7 + $0x28] sm:$0xff]  ;;  %v1530_v44 = vor.u32 %v1653_v34, %v1529_v33  ;;  %v1517_v50 = vld [vmem:[#allocation8 + $0x30] sm:$0xf]  ;;  %v533_v53 = vadd.f32 %v1677_v24, %v525_v37  ;;  %v534_v54 = vadd.f32 %v1678_v25, %v526_v40 }
  0x53   : > { %v1445_v45 = vld [vmem:[%s2623_s5 + $0x20] sm:$0xf]  ;;  %v1632_v46 = vld [vmem:[%s2623_s5 + $0x24] sm:$0xf0]  ;;  %v537_v55 = vadd.f32 %v1685_v41, %v529_v42  ;;  %v538_v56 = vadd.f32 %v1686_v47, %v530_v43  ;;  %v1437_v61 = vld [vmem:[%s2623_s5 + $0x10] sm:$0xf] }
  0x54   : > { %678 = vmatpush.bf16.msra.mxu0 %v1470_v16  ;;  %1696 = vmatpush.bf16.msra.mxu3 %v1470_v16  ;;  %v503_v39 = vadd.f32 %v1681_v31, %v502_v35  ;;  %v1650_v51 = vld [vmem:[#allocation8 + $0x38] sm:$0xf0]  ;;  %v1446_v57 = vor.u32 %v1632_v46, %v1445_v45  ;;  %v1630_v62 = vld [vmem:[%s2623_s5 + $0x14] sm:$0xf0]  ;;  %v1647_v1 = vld [vmem:[#allocation8 + $0x20] sm:$0xf0]  ;;  %v541_v4 = vpack.c.bf16 %v533_v53, %v533_v53 }
  0x55   : > { %904 = vmatpush.bf16.msra.mxu2 %v1554_v17  ;;  %v2353_v49 = vpop.eup %1806  ;;  %v1518_v60 = vor.u32 %v1650_v51, %v1517_v50  ;;  %v1505_v0 = vld [vmem:[#allocation8 + $0x18] sm:$0xf]  ;;  %v542_v5 = vpack.c.bf16 %v534_v54, %v534_v54  ;;  %v545_v6 = vpack.c.bf16 %v537_v55, %v537_v55  ;;  %v546_v7 = vpack.c.bf16 %v538_v56, %v538_v56  ;;  %v1429_v9 = vld [vmem:[%s2623_s5] sm:$0xf]  ;;  %v1628_v12 = vld [vmem:[%s2623_s5 + $0x4] sm:$0xf0]  ;;  %s1291_s21 = scalar_lea.hbm %s2650_s16, %s2184_s24 }
  0x56   : > { %v504_v52 = vadd.f32 %v1682_v36, %v503_v39  ;;  %v516_v63 = vmul.f32 64.0, %v2353_v49  ;;  %v1438_v8 = vor.u32 %v1630_v62, %v1437_v61  ;;  %v1506_v11 = vor.u32 %v1647_v1, %v1505_v0  ;;  %v1493_v13 = vld [vmem:[#allocation8] sm:$0xf]  ;;  %v1644_v15 = vld [vmem:[#allocation8 + $0x8] sm:$0xf0]  ;;  %v527_v35 = vld [vmem:[#allocation7 + $0x10] sm:$0xff] }
  0x57   : > { %v1664_v17 = vld [vmem:[#allocation8 + $0xac] sm:$0xf]  ;;  %v1579_v18 = vld [vmem:[#allocation8 + $0xb4] sm:$0xf0]  ;;  %v580_v19 = vunpack.c.l.b16 %v541_v4  ;;  %v581_v20 = vunpack.c.l.b16 %v542_v5  ;;  %v584_v21 = vunpack.c.l.b16 %v545_v6  ;;  %v585_v22 = vunpack.c.l.b16 %v546_v7  ;;  %v1661_v30 = vld [vmem:[#allocation8 + $0x94] sm:$0xf] }
  0x58   : > { %679 = vmatpush.bf16.msra.mxu0 %v1462_v23  ;;  %1697 = vmatpush.bf16.msra.mxu3 %v1462_v23  ;;  %v505_v59 = vadd.f32 %v1685_v41, %v504_v52  ;;  %v517_v14 = vsub.f32 1.0, %v516_v63  ;;  %v1430_v23 = vor.u32 %v1628_v12, %v1429_v9  ;;  %v1494_v25 = vor.u32 %v1644_v15, %v1493_v13  ;;  %v1567_v32 = vld [vmem:[#allocation8 + $0x9c] sm:$0xf0]  ;;  %v531_v39 = vld [vmem:[#allocation7 + $0x30] sm:$0xff]  ;;  %v532_v40 = vld [vmem:[#allocation7 + $0x38] sm:$0xff]  ;;  %s1295_s15 = sshll.u32 %s1291_s21, 4  ;;  %s1296_s15 = int_to_ptr.hbm [resolvable:$true] %s1295_s15 }
  0x59   : > { %905 = vmatpush.bf16.msra.mxu2 %v1542_v28  ;;  %v1582_v28 = vor.u32 %v1664_v17, %v1579_v18  ;;  %v2375_v33 = vpack.c.b16 %v581_v20, %v580_v19  ;;  %v2377_v34 = vpack.c.b16 %v585_v22, %v584_v21  ;;  %v1570_v42 = vor.u32 %v1661_v30, %v1567_v32  ;;  %v1555_v45 = vld [vmem:[#allocation8 + $0x84] sm:$0xf0]  ;;  %v958_v52 = vld [vmem:[%s2627_s9 + $0x78] sm:$0xff]  ;;  %v957_v53 = vld [vmem:[%s2627_s9 + $0x70] sm:$0xff]  ;;  %s2022_s7 = sshra.s32 %s1296_s15, 4  ;;  %s2028_s24 = scalar_lea.hbm %s2650_s16, 2  ;;  %s2023_s7 = int_to_ptr.hbm [resolvable:$true] %s2022_s7 }
  0x5a   : > { %v506_v3 = vadd.f32 %v1686_v47, %v505_v59  ;;  %v518_v27 = vmul.f32 %v2353_v49, %v517_v14  ;;  %vm520_vm0 = vweird.f32 %v2353_v49  ;;  %v535_v46 = vadd.f32 %v1681_v31, %v527_v35  ;;  %v956_v26 = vld [vmem:[%s2627_s9 + $0x68] sm:$0xff]  ;;  %v1543_v56 = vld [vmem:[#allocation8 + $0x6c] sm:$0xf0]  ;;  %v955_v62 = vld [vmem:[%s2627_s9 + $0x60] sm:$0xff]  ;;  %s2024_s25 = scalar_lea.hbm %s2023_s7, 1  ;;  %p2029_p12 = scmp.lt.s32.totalorder %s2023_s7, %s2650_s16 }
  0x5b   : > { %v539_v50 = vadd.f32 %v1689_v58, %v531_v39  ;;  %v540_v51 = vadd.f32 %v1690_v2, %v532_v40  ;;  %v1655_v48 = vld [vmem:[#allocation8 + $0x64] sm:$0xf]  ;;  %v954_v0 = vld [vmem:[%s2627_s9 + $0x58] sm:$0xff]  ;;  %v1519_v13 = vld [vmem:[#allocation8 + $0x3c] sm:$0xf0]  ;;  %vm1121_vm2 = vcmask 1041408   ;;  %p2025_p1 = scmp.ne.s32.totalorder %s2023_s7, %s2024_s25  ;;  %p2030_p8 = scmp.lt.s32.totalorder %s2028_s24, %s2024_s25 }
  0x5c   : > { %680 = vmatpush.bf16.msra.mxu0 %v1454_v38  ;;  %1698 = vmatpush.bf16.msra.mxu3 %v1454_v38  ;;  %v507_v10 = vadd.f32 %v1689_v58, %v506_v3  ;;  %v528_v38 = vld [vmem:[#allocation7 + $0x18] sm:$0xff]  ;;  %v519_v41 = vadd.f32 %v2353_v49, %v518_v27  ;;  %v543_v58 = vpack.c.bf16 %v535_v46, %v535_v46  ;;  %v1649_v12 = vld [vmem:[#allocation8 + $0x34] sm:$0xf]  ;;  %v1507_v20 = vld [vmem:[#allocation8 + $0x24] sm:$0xf0] }
  0x5d   : > { %906 = vmatpush.bf16.msra.mxu2 %v1530_v44  ;;  %v1658_v44 = vld [vmem:[#allocation8 + $0x7c] sm:$0xf]  ;;  %v536_v47 = vadd.f32 %v1682_v36, %v528_v38  ;;  %v548_v61 = vpack.c.bf16 %v540_v51, %v540_v51  ;;  %v1546_v63 = vor.u32 %v1655_v48, %v1543_v56  ;;  %v1531_v3 = vld [vmem:[#allocation8 + $0x54] sm:$0xf0]  ;;  %v1522_v17 = vor.u32 %v1649_v12, %v1519_v13  ;;  %v1643_v22 = vld [vmem:[#allocation8 + $0x4] sm:$0xf]  ;;  %p2026_p3 = pnand %p2025_p1, %p2249_p13  ;;  %p2031_p7 = por %p2030_p8, %p2029_p12 }
  0x5e   : > { %v508_v16 = vadd.f32 %v1690_v2, %v507_v10  ;;  %v521_v54 = vsel %vm520_vm0, %v2353_v49, %v519_v41  ;;  %v1558_v55 = vor.u32 %v1658_v44, %v1555_v45  ;;  %v1652_v2 = vld [vmem:[#allocation8 + $0x4c] sm:$0xf]  ;;  %v582_v4 = vunpack.c.l.b16 %v543_v58  ;;  %v950_v18 = vld [vmem:[%s2627_s9 + $0x38] sm:$0xff]  ;;  %v943_v35 = vld [vmem:[%s2627_s9] sm:$0xff] }
  0x5f   : > { %v544_v59 = vpack.c.bf16 %v536_v47, %v536_v47  ;;  %v587_v7 = vunpack.c.l.b16 %v548_v61  ;;  %v1534_v10 = vor.u32 %v1652_v2, %v1531_v3  ;;  %v1646_v19 = vld [vmem:[#allocation8 + $0x1c] sm:$0xf]  ;;  %v948_v27 = vld [vmem:[%s2627_s9 + $0x28] sm:$0xff]  ;;  %v945_v30 = vld [vmem:[%s2627_s9 + $0x10] sm:$0xff]  ;;  %p2027_p4 = pneg %p2026_p3 }
  0x60   : > { %681 = vmatpush.bf16.msra.mxu0 %v1446_v57  ;;  %1699 = vmatpush.bf16.msra.mxu3 %v1446_v57  ;;  %v509_v24 = vrot.slane %v508_v16, 4  ;;  %v523_v57 = vld [vmem:[#allocation5] sm:$0x1]  ;;  %v1510_v21 = vor.u32 %v1646_v19, %v1507_v20  ;;  %v944_v32 = vld [vmem:[%s2627_s9 + $0x8] sm:$0xff] }
  0x61   : > { %907 = vmatpush.bf16.msra.mxu2 %v1518_v60  ;;  %v547_v60 = vpack.c.bf16 %v539_v50, %v539_v50  ;;  %v583_v5 = vunpack.c.l.b16 %v544_v59  ;;  %v2451_v39 = vld [vmem:[%s2624_s6] sm:$0x3]  ;;  %p2032_p9 = pnand %p2031_p7, %p2027_p4 }
  0x62   : > { %v510_v29 = vadd.f32 %v509_v24, %v508_v16  ;;  %v951_v16 = vld [vmem:[%s2627_s9 + $0x40] sm:$0xff]  ;;  %v568_v41 = vperm.slane %v2451_v39, 0 }
  0x63   : > { %v586_v6 = vunpack.c.l.b16 %v547_v60  ;;  %v2414_v14 = vpack.c.b16 %v583_v5, %v582_v4  ;;  %v2456_v40 = vld [vmem:[%s2622_s4] sm:$0x7] }
  0x64   : > { %682 = vmatpush.bf16.msra.mxu0 %v1438_v8  ;;  %1700 = vmatpush.bf16.msra.mxu3 %v1438_v8  ;;  %v511_v37 = vrot.slane %v510_v29, 2  ;;  %v953_v8 = vld [vmem:[%s2627_s9 + $0x50] sm:$0xff]  ;;  %v897_v48 = vperm.slane %v2456_v40, 1 }
  0x65   : > { %908 = vmatpush.bf16.msra.mxu2 %v1506_v11  ;;  %v952_v11 = vld [vmem:[%s2627_s9 + $0x48] sm:$0xff]  ;;  %v2416_v15 = vpack.c.b16 %v587_v7, %v586_v6 }
  0x66   : > { %v512_v43 = vadd.f32 %v511_v37, %v510_v29  ;;  %v946_v29 = vld [vmem:[%s2627_s9 + $0x18] sm:$0xff] }
  0x68   : > { %683 = vmatpush.bf16.msra.mxu0 %v1430_v23  ;;  %1701 = vmatpush.bf16.msra.mxu3 %v1430_v23  ;;  %v513_v31 = vrot.slane %v512_v43, 1  ;;  %v1495_v23 = vld [vmem:[#allocation8 + $0xc] sm:$0xf0] }
  0x69   : > { %909 = vmatpush.bf16.msra.mxu2 %v1494_v25  ;;  %v1498_v24 = vor.u32 %v1643_v22, %v1495_v23  ;;  %v949_v25 = vld [vmem:[%s2627_s9 + $0x30] sm:$0xff]  ;;  %v1663_v22 = vld [vmem:[#allocation8 + $0xa0] sm:$0xf0] }
  0x6a   : > { %v514_v36 = vadd.f32 %v513_v31, %v512_v43 }
  0x6b   : > { %684 = vmatmul.bf16.vlgmr.msra.gmra.mxu0 %v2375_v33  ;;  %694 = vmatmul.bf16.vlgmr.msra.gmra.mxu3 %v2377_v34 }
  0x6c   : > { %915 = vmatpush.bf16.msrb.mxu3 %v1582_v28  ;;  %987 = vmatpush.msrb.mxu0 %v958_v52  ;;  %v522_v49 = vmul.f32 %v521_v54, %v514_v36  ;;  %v947_v28 = vld [vmem:[%s2627_s9 + $0x20] sm:$0xff] }
  0x6e   : > { %988 = vmatpush.msrb.mxu0 %v957_v53  ;;  %v524_v1 = vadd.f32 %v523_v57, %v522_v49 }
  0x70   : > { %916 = vmatpush.bf16.msrb.mxu3 %v1570_v42  ;;  %989 = vmatpush.msrb.mxu0 %v956_v26  ;;  %v2408_v9 = vpack.c.bf16 %v524_v1, %v524_v1  ;;  %v896_v42 = vperm.slane %v2456_v40, 0 }
  0x72   : > { %990 = vmatpush.msrb.mxu0 %v955_v62  ;;  %910 = vmatmul.bf16.vlgmr.msra.gmra.mxu2 %v2408_v9 }
  0x74   : > { %917 = vmatpush.bf16.msrb.mxu3 %v1558_v55  ;;  %991 = vmatpush.msrb.mxu0 %v954_v0 }
  0x76   : > { %992 = vmatpush.msrb.mxu0 %v953_v8 }
  0x78   : > { %918 = vmatpush.bf16.msrb.mxu3 %v1546_v63  ;;  %993 = vmatpush.msrb.mxu0 %v952_v11 }
  0x7a   : > { %994 = vmatpush.msrb.mxu0 %v951_v16 }
  0x7b   : > { %689 = vmatmul.bf16.gmra.mxu0 %v2414_v14  ;;  %699 = vmatmul.bf16.gmra.mxu3 %v2416_v15 }
  0x7c   : > { %919 = vmatpush.bf16.msrb.mxu3 %v1534_v10  ;;  %995 = vmatpush.msrb.mxu0 %v950_v18 }
  0x7e   : > { %996 = vmatpush.msrb.mxu0 %v949_v25 }
  0x80   : > { %920 = vmatpush.bf16.msrb.mxu3 %v1522_v17  ;;  %997 = vmatpush.msrb.mxu0 %v948_v27  ;;  %v1585_v17 = vld [vmem:[#allocation8 + $0xb0] sm:$0xf] }
  0x82   : > { %998 = vmatpush.msrb.mxu0 %v947_v28 }
  0x84   : > { %921 = vmatpush.bf16.msrb.mxu3 %v1510_v21  ;;  %999 = vmatpush.msrb.mxu0 %v946_v29  ;;  %v1573_v21 = vld [vmem:[#allocation8 + $0x98] sm:$0xf] }
  0x86   : > { %1000 = vmatpush.msrb.mxu0 %v945_v30 }
  0x88   : > { %922 = vmatpush.bf16.msrb.mxu3 %v1498_v24  ;;  %1001 = vmatpush.msrb.mxu0 %v944_v32 }
  0x8a   : > { %1002 = vmatpush.msrb.mxu0 %v943_v35 }
  0x8b   : > { %923 = vmatmul.bf16.vlgmr.msrb.gmra.mxu3 %v2408_v9 }
  0x8c   : > { %959 = vmatpush.msra.mxu3 %v958_v52 }
  0x8e   : > { %960 = vmatpush.msra.mxu3 %v957_v53 }
  0x90   : > { %961 = vmatpush.msra.mxu3 %v956_v26 }
  0x92   : > { %962 = vmatpush.msra.mxu3 %v955_v62 }
  0x94   : > { %963 = vmatpush.msra.mxu3 %v954_v0 }
  0x96   : > { %964 = vmatpush.msra.mxu3 %v953_v8 }
  0x98   : > { %965 = vmatpush.msra.mxu3 %v952_v11 }
  0x9a   : > { %966 = vmatpush.msra.mxu3 %v951_v16 }
  0x9c   : > { %967 = vmatpush.msra.mxu3 %v950_v18  ;;  %v1666_v18 = vld [vmem:[#allocation8 + $0xb8] sm:$0xf0] }
  0x9d   : > { %v1586_v19 = vor.u32 %v1666_v18, %v1585_v17 }
  0x9e   : > { %968 = vmatpush.msra.mxu3 %v949_v25 }
  0x9f   : > { %928 = vmatpush.bf16.msrb.mxu2 %v1586_v19  ;;  %v1637_v19 = vld [vmem:[%s2623_s5 + $0x54] sm:$0xf] }
  0xa0   : > { %969 = vmatpush.msra.mxu3 %v948_v27  ;;  %v1574_v27 = vor.u32 %v1663_v22, %v1573_v21 }
  0xa2   : > { %970 = vmatpush.msra.mxu3 %v947_v28 }
  0xa3   : > { %929 = vmatpush.bf16.msrb.mxu2 %v1574_v27  ;;  %v1645_v27 = vld [vmem:[#allocation8 + $0x10] sm:$0xf0] }
  0xa4   : > { %971 = vmatpush.msra.mxu3 %v946_v29 }
  0xa6   : > { %972 = vmatpush.msra.mxu3 %v945_v30 }
  0xa8   : > { %973 = vmatpush.msra.mxu3 %v944_v32 }
  0xaa   : > { %974 = vmatpush.msra.mxu3 %v943_v35 }
  0xe8   : > { %v685_v38 = vpop.f32.mrf.mxu0 }
  0xe9   : > { %v686_v45 = vadd.f32 %v685_v38, %v568_v41 }
  0xee   : > { %v695_v37 = vpop.f32.mrf.mxu3 }
  0xef   : > { %v696_v63 = vadd.f32 %v695_v37, %v568_v41 }
  0xf0   : > { %v687_v47 = vpop.f32.mrf.mxu0 }
  0xf1   : > { %v688_v31 = vadd.f32 %v687_v47, %v568_v41 }
  0xf5   : > { %v911_v44 = vpop.f32.mrf.mxu2 }
  0xf6   : > { %v697_v43 = vpop.f32.mrf.mxu3  ;;  %v912_v46 = vadd.f32 %v911_v44, %v896_v42  ;;  %v1660_v44 = vld [vmem:[#allocation8 + $0x88] sm:$0xf0] }
  0xf7   : > { %v698_v1 = vadd.f32 %v697_v43, %v568_v41  ;;  %v1561_v43 = vld [vmem:[#allocation8 + $0x80] sm:$0xf] }
  0xf8   : > { %v941_v50 = vperm.slane %v912_v46, 0  ;;  %v690_v54 = vpop.f32.mrf.mxu0 }
  0xf9   : > { %v691_v36 = vadd.f32 %v690_v54, %v568_v41 }
  0xfa   : > { %v979_v51 = vmul.f32 %v941_v50, %v686_v45  ;;  %v980_v55 = vmul.f32 %v941_v50, %v688_v31  ;;  %v983_v0 = vmul.f32 %v941_v50, %v696_v63  ;;  %v984_v2 = vmul.f32 %v941_v50, %v698_v1  ;;  %v1479_v1 = vld [vmem:[%s2623_s5 + $0x68] sm:$0xf0] }
  0xfb   : > { %v981_v56 = vmul.f32 %v941_v50, %v691_v36  ;;  %v1562_v45 = vor.u32 %v1660_v44, %v1561_v43  ;;  %v1455_v43 = vld [vmem:[%s2623_s5 + $0x38] sm:$0xf0] }
  0xfc   : > { %1003 = vmatmul.f32.vlgmr.msrb.gmra.mxu0 %v979_v51  ;;  %v1549_v51 = vld [vmem:[#allocation8 + $0x68] sm:$0xf] }
  0xfd   : > { %v913_v53 = vpop.f32.mrf.mxu2  ;;  %930 = vmatpush.bf16.msrb.mxu2 %v1562_v45 }
  0xfe   : > { %v700_v52 = vpop.f32.mrf.mxu3 }
  0xff   : > { %v701_v3 = vadd.f32 %v700_v52, %v568_v41  ;;  %v1657_v52 = vld [vmem:[#allocation8 + $0x70] sm:$0xf0] }
 0x100   : > { %v692_v58 = vpop.f32.mrf.mxu0  ;;  %v1550_v53 = vor.u32 %v1657_v52, %v1549_v51  ;;  %v1447_v51 = vld [vmem:[%s2623_s5 + $0x28] sm:$0xf0] }
 0x101   : > { %v693_v61 = vadd.f32 %v692_v58, %v568_v41  ;;  %v985_v4 = vmul.f32 %v941_v50, %v701_v3  ;;  %v1487_v58 = vld [vmem:[%s2623_s5 + $0x78] sm:$0xf0] }
 0x102   : > { %931 = vmatpush.bf16.msrb.mxu2 %v1550_v53 }
 0x103   : > { %v982_v62 = vmul.f32 %v941_v50, %v693_v61  ;;  %v1651_v61 = vld [vmem:[#allocation8 + $0x40] sm:$0xf0] }
 0x104   : > { %1006 = vmatmul.f32.gmra.mxu0 %v980_v55  ;;  %v1537_v55 = vld [vmem:[#allocation8 + $0x50] sm:$0xf] }
 0x106   : > { %v702_v26 = vpop.f32.mrf.mxu3 }
 0x107   : > { %v703_v5 = vadd.f32 %v702_v26, %v568_v41  ;;  %v1654_v26 = vld [vmem:[#allocation8 + $0x58] sm:$0xf0] }
 0x108   : > { %v1538_v36 = vor.u32 %v1654_v26, %v1537_v55 }
 0x109   : > { %v986_v6 = vmul.f32 %v941_v50, %v703_v5  ;;  %v1648_v5 = vld [vmem:[#allocation8 + $0x28] sm:$0xf0] }
 0x10a   : > { %932 = vmatpush.bf16.msrb.mxu2 %v1538_v36 }
 0x10c   : > { %1009 = vmatmul.f32.gmra.mxu0 %v981_v56 }
 0x10e   : > { %v924_v57 = vpop.f32.mrf.mxu3 }
 0x10f   : > { %v925_v59 = vadd.f32 %v924_v57, %v897_v48  ;;  %v1641_v57 = vld [vmem:[%s2623_s5 + $0x74] sm:$0xf] }
 0x111   : > { %v942_v60 = vmul.f32 %v925_v59, %v912_v46  ;;  %v1525_v59 = vld [vmem:[#allocation8 + $0x38] sm:$0xf] }
 0x113   : > { %975 = vmatmul.f32.vlgmr.msra.gmra.mxu3 %v942_v60  ;;  %v1490_v60 = vor.u32 %v1641_v57, %v1487_v58 }
 0x114   : > { %1012 = vmatmul.f32.gmra.mxu0 %v982_v62 }
 0x115   : > { %705 = vmatpush.bf16.msra.mxu1 %v1490_v60  ;;  %v1117_v60 = vld [vmem:[%s2628_s10] sm:$0x3] }
 0x116   : > { %v926_v49 = vpop.f32.mrf.mxu3 }
 0x117   : > { %v1526_v49 = vor.u32 %v1651_v61, %v1525_v59 }
 0x119   : > { %933 = vmatpush.bf16.msrb.mxu2 %v1526_v49 }
 0x11c   : > { %1015 = vmatmul.f32.gmra.mxu0 %v983_v0  ;;  %v1639_v0 = vld [vmem:[%s2623_s5 + $0x64] sm:$0xf] }
 0x124   : > { %1018 = vmatmul.f32.gmra.mxu0 %v984_v2  ;;  %v1513_v2 = vld [vmem:[#allocation8 + $0x20] sm:$0xf] }
 0x125   : > { %v1514_v17 = vor.u32 %v1648_v5, %v1513_v2 }
 0x127   : > { %934 = vmatpush.bf16.msrb.mxu2 %v1514_v17 }
 0x12c   : > { %1021 = vmatmul.f32.gmra.mxu0 %v985_v4  ;;  %v1482_v4 = vor.u32 %v1639_v0, %v1479_v1  ;;  %v1627_v0 = vld [vmem:[%s2623_s5 + $0x4] sm:$0xf]  ;;  %v1431_v1 = vld [vmem:[%s2623_s5 + $0x8] sm:$0xf0] }
 0x12e   : > { %706 = vmatpush.bf16.msra.mxu1 %v1482_v4 }
 0x134   : > { %1024 = vmatmul.f32.gmra.mxu0 %v986_v6 }
 0x179   : > { %v2461_v7 = vpop.f32.mrf.mxu0 }
 0x17a   : > { %v1029_v30 = vsel %vm1028_vm1, %v2461_v7, -inf }
 0x181   : > { %v2463_v8 = vpop.f32.mrf.mxu0 }
 0x182   : > { %v1030_v23 = vsel %vm1028_vm1, %v2463_v8, -inf }
 0x189   : > { %v2465_v10 = vpop.f32.mrf.mxu0 }
 0x18a   : > { %v1031_v32 = vsel %vm1028_vm1, %v2465_v10, -inf }
 0x191   : > { %v2467_v11 = vpop.f32.mrf.mxu0 }
 0x192   : > { %v1032_v35 = vsel %vm1028_vm1, %v2467_v11, -inf }
 0x196   : > { %v2505_v3 = vpop.f32.mrf.mxu3 }
 0x199   : > { %v2469_v12 = vpop.f32.mrf.mxu0 }
 0x19a   : > { %v1033_v24 = vsel %vm1028_vm1, %v2469_v12, -inf }
 0x19b   : > { %v1034_v38 = vmax.f32 %v1029_v30, %v1033_v24 }
 0x1a1   : > { %v2471_v13 = vpop.f32.mrf.mxu0 }
 0x1a2   : > { %v1035_v20 = vsel %vm1028_vm1, %v2471_v13, -inf }
 0x1a3   : > { %v1036_v28 = vmax.f32 %v1030_v23, %v1035_v20  ;;  %v1471_v20 = vld [vmem:[%s2623_s5 + $0x58] sm:$0xf0] }
 0x1a4   : > { %v1474_v21 = vor.u32 %v1637_v19, %v1471_v20 }
 0x1a5   : > { %v1041_v46 = vmax.f32 %v1034_v38, %v1036_v28 }
 0x1a6   : > { %707 = vmatpush.bf16.msra.mxu1 %v1474_v21 }
 0x1a9   : > { %v2473_v16 = vpop.f32.mrf.mxu0 }
 0x1aa   : > { %v1037_v25 = vsel %vm1028_vm1, %v2473_v16, -inf }
 0x1ab   : > { %v1038_v41 = vmax.f32 %v1031_v32, %v1037_v25  ;;  %v1501_v25 = vld [vmem:[#allocation8 + $0x8] sm:$0xf] }
 0x1b1   : > { %v2483_v29 = vpop.f32.mrf.mxu0 }
 0x1b2   : > { %v1039_v37 = vsel %vm1028_vm1, %v2483_v29, -inf }
 0x1b3   : > { %v1040_v42 = vmax.f32 %v1032_v35, %v1039_v37 }
 0x1b5   : > { %v1042_v47 = vmax.f32 %v1038_v41, %v1040_v42  ;;  %v1502_v42 = vor.u32 %v1645_v27, %v1501_v25 }
 0x1b7   : > { %v1043_v50 = vmax.f32 %v1041_v46, %v1042_v47  ;;  %935 = vmatpush.bf16.msrb.mxu2 %v1502_v42 }
 0x1b9   : > { %v1044_v31 = vrot.slane %v1043_v50, 4 }
 0x1ba   : > { %936 = vmatmul.bf16.vlgmr.msrb.gmra.mxu2 %v2408_v9 }
 0x1bb   : > { %v1045_v54 = vmax.f32 %v1043_v50, %v1044_v31  ;;  %v1631_v50 = vld [vmem:[%s2623_s5 + $0x24] sm:$0xf] }
 0x1bd   : > { %v1046_v48 = vrot.slane %v1045_v54, 2 }
 0x1bf   : > { %v1047_v56 = vmax.f32 %v1045_v54, %v1046_v48  ;;  %v1450_v54 = vor.u32 %v1631_v50, %v1447_v51  ;;  %v1629_v48 = vld [vmem:[%s2623_s5 + $0x14] sm:$0xf] }
 0x1c1   : > { %v1048_v62 = vrot.slane %v1047_v56, 1 }
 0x1c3   : > { %v1049_v63 = vmax.f32 %v1047_v56, %v1048_v62  ;;  %v1439_v56 = vld [vmem:[%s2623_s5 + $0x18] sm:$0xf0] }
 0x1c4   : > { %v1442_v61 = vor.u32 %v1629_v48, %v1439_v56  ;;  %v1671_v48 = vld [vmem:[#allocation10 + $0x20] sm:$0xff] }
 0x1c5   : > { %v2508_v6 = vmax.f32 %v1049_v63, %v2505_v3  ;;  %v1123_v63 = vsel %vm1121_vm2, %v1117_v60, 0 }
 0x1c6   : > { %1157 = vmatpush.bf16.msra.mxu2 %v1123_v63  ;;  %1132 = vmatpush.bf16.msrb.mxu3 %v1123_v63 }
 0x1c7   : > { %v1054_v18 = vperm.slane %v2508_v6, 0 }
 0x1c9   : > { %v1055_v22 = vsub.f32 %v2461_v7, %v1054_v18  ;;  %v1056_v23 = vsub.f32 %v2463_v8, %v1054_v18  ;;  %v1057_v24 = vsub.f32 %v2465_v10, %v1054_v18  ;;  %v1058_v28 = vsub.f32 %v2467_v11, %v1054_v18  ;;  %v1635_v7 = vld [vmem:[%s2623_s5 + $0x44] sm:$0xf]  ;;  %v1463_v11 = vld [vmem:[%s2623_s5 + $0x48] sm:$0xf0] }
 0x1ca   : > { %v1059_v30 = vsub.f32 %v2469_v12, %v1054_v18  ;;  %v1060_v37 = vsub.f32 %v2471_v13, %v1054_v18  ;;  %v1061_v8 = vsub.f32 %v2473_v16, %v1054_v18  ;;  %v1466_v12 = vor.u32 %v1635_v7, %v1463_v11  ;;  %v1633_v13 = vld [vmem:[%s2623_s5 + $0x34] sm:$0xf] }
 0x1cb   : > { %v1063_v32 = vmul.f32 1.442695, %v1055_v22  ;;  %v1065_v35 = vmul.f32 1.442695, %v1056_v23  ;;  %v1067_v38 = vmul.f32 1.442695, %v1057_v24  ;;  %v1062_v44 = vsub.f32 %v2483_v29, %v1054_v18 }
 0x1cc   : > { %v1069_v41 = vmul.f32 1.442695, %v1058_v28  ;;  %v1071_v10 = vmul.f32 1.442695, %v1059_v30  ;;  %v1073_v16 = vmul.f32 1.442695, %v1060_v37  ;;  %708 = vmatpush.bf16.msra.mxu1 %v1466_v12  ;;  %v1458_v45 = vor.u32 %v1633_v13, %v1455_v43 }
 0x1cd   : > { %1808 = vpow2.f32 %v1063_v32  ;;  %v1075_v46 = vmul.f32 1.442695, %v1061_v8  ;;  %v1077_v29 = vmul.f32 1.442695, %v1062_v44  ;;  %v1434_v18 = vor.u32 %v1627_v0, %v1431_v1  ;;  %v1668_v0 = vld [vmem:[#allocation10 + $0x8] sm:$0xff] }
 0x1ce   : > { %1810 = vpow2.f32 %v1065_v35  ;;  %v1051_v23 = vsub.f32 %v2505_v3, %v2508_v6  ;;  %v569_v1 = vperm.slane %v2451_v39, 1 }
 0x1cf   : > { %1812 = vpow2.f32 %v1067_v38 }
 0x1d0   : > { %1814 = vpow2.f32 %v1069_v41  ;;  %709 = vmatpush.bf16.msra.mxu1 %v1458_v45  ;;  %v1052_v28 = vmul.f32 1.442695, %v1051_v23 }
 0x1d1   : > { %1816 = vpow2.f32 %v1071_v10 }
 0x1d2   : > { %1818 = vpow2.f32 %v1073_v16 }
 0x1d3   : > { %v2538_v47 = vpop.eup %1808  ;;  %1820 = vpow2.f32 %v1075_v46 }
 0x1d4   : > { %v1811_v52 = vpop.eup %1810  ;;  %v1079_v9 = vsel %vm1028_vm1, %v2538_v47, 0.0  ;;  %1822 = vpow2.f32 %v1077_v29  ;;  %710 = vmatpush.bf16.msra.mxu1 %v1450_v54  ;;  %v1672_v54 = vld [vmem:[#allocation10 + $0x28] sm:$0xff] }
 0x1d5   : > { %v1813_v53 = vpop.eup %1812  ;;  %v1080_v31 = vsel %vm1028_vm1, %v1811_v52, 0.0  ;;  %1824 = vpow2.f32 %v1052_v28 }
 0x1d6   : > { %v1815_v55 = vpop.eup %1814  ;;  %v1081_v26 = vadd.f32 %v1080_v31, %v1079_v9  ;;  %v1082_v36 = vsel %vm1028_vm1, %v1813_v53, 0.0  ;;  %v1673_v9 = vld [vmem:[#allocation10 + $0x30] sm:$0xff]  ;;  %v898_v31 = vperm.slane %v2456_v40, 2 }
 0x1d7   : > { %v1817_v57 = vpop.eup %1816  ;;  %v1084_v59 = vsel %vm1028_vm1, %v1815_v55, 0.0 }
 0x1d8   : > { %v1083_v58 = vadd.f32 %v1082_v36, %v1081_v26  ;;  %v1819_v62 = vpop.eup %1818  ;;  %v1086_v2 = vsel %vm1028_vm1, %v1817_v57, 0.0  ;;  %711 = vmatpush.bf16.msra.mxu1 %v1442_v61  ;;  %v1669_v61 = vld [vmem:[#allocation10 + $0x10] sm:$0xff] }
 0x1d9   : > { %v1821_v4 = vpop.eup %1820  ;;  %v1088_v17 = vsel %vm1028_vm1, %v1819_v62, 0.0 }
 0x1da   : > { %v1085_v49 = vadd.f32 %v1084_v59, %v1083_v58  ;;  %v1823_v19 = vpop.eup %1822  ;;  %v1090_v21 = vsel %vm1028_vm1, %v1821_v4, 0.0  ;;  %v1670_v58 = vld [vmem:[#allocation10 + $0x18] sm:$0xff] }
 0x1db   : > { %v1092_v24 = vsel %vm1028_vm1, %v1823_v19, 0.0  ;;  %v1825_v41 = vpop.eup %1824 }
 0x1dc   : > { %v1087_v5 = vadd.f32 %v1086_v2, %v1085_v49  ;;  %712 = vmatpush.bf16.msra.mxu1 %v1434_v18  ;;  %v1667_v2 = vld [vmem:[#allocation10] sm:$0xff] }
 0x1de   : > { %v1089_v20 = vadd.f32 %v1088_v17, %v1087_v5 }
 0x1df   : > { %713 = vmatmul.bf16.vlgmr.msra.gmra.mxu1 %v2375_v33 }
 0x1e0   : > { %v1091_v22 = vadd.f32 %v1090_v21, %v1089_v20 }
 0x1e2   : > { %v1093_v25 = vadd.f32 %v1092_v24, %v1091_v22 }
 0x1e4   : > { %v1094_v27 = vrot.slane %v1093_v25, 4 }
 0x1e6   : > { %v1095_v30 = vadd.f32 %v1094_v27, %v1093_v25 }
 0x1e8   : > { %v1096_v32 = vrot.slane %v1095_v30, 2 }
 0x1ea   : > { %v1097_v35 = vadd.f32 %v1096_v32, %v1095_v30 }
 0x1ec   : > { %v1098_v37 = vrot.slane %v1097_v35, 1 }
 0x1ee   : > { %v1099_v38 = vadd.f32 %v1098_v37, %v1097_v35 }
 0x1ef   : > { %718 = vmatmul.bf16.gmra.mxu1 %v2414_v14 }
 0x1f0   : > { %v1100_v42 = vadd.f32 %v1825_v41, %v1099_v38 }
 0x1f2   : > { %1826 = vrcp.f32 %v1100_v42 }
 0x1f8   : > { %v1827_v3 = vpop.eup %1826 }
 0x1f9   : > { %v1104_v6 = vperm.slane %v1827_v3, 0  ;;  %v1102_v7 = vmul.f32 %v1827_v3, %v1825_v41 }
 0x1fb   : > { %v1103_v8 = vpack.c.bf16 %v1102_v7, %v1102_v7  ;;  %v1105_v10 = vmul.f32 %v2538_v47, %v1104_v6  ;;  %v1106_v11 = vmul.f32 %v1811_v52, %v1104_v6  ;;  %v1107_v33 = vmul.f32 %v1813_v53, %v1104_v6  ;;  %v1674_v52 = vld [vmem:[#allocation10 + $0x38] sm:$0xff] }
 0x1fc   : > { %v1108_v12 = vmul.f32 %v1815_v55, %v1104_v6  ;;  %v1109_v13 = vmul.f32 %v1817_v57, %v1104_v6  ;;  %v1110_v43 = vmul.f32 %v1819_v62, %v1104_v6  ;;  %v1111_v44 = vmul.f32 %v1821_v4, %v1104_v6  ;;  %1268 = vmatpush.bf16.msrb.mxu1 %v1674_v52 }
 0x1fd   : > { %1587 = vmatmul.msk.bf16.vlgmr.msrb.gmra.mxu3 %vm1028_vm1, %v1103_v8  ;;  %v1113_v16 = vpack.c.bf16 %v1106_v11, %v1105_v10  ;;  %v1112_v45 = vmul.f32 %v1823_v19, %v1104_v6 }
 0x1fe   : > { %v1114_v46 = vpack.c.bf16 %v1108_v12, %v1107_v33  ;;  %v1115_v50 = vpack.c.bf16 %v1110_v43, %v1109_v13 }
 0x1ff   : > { %1588 = vmatmul.msk.bf16.vlgmr.msra.gmra.mxu2 %vm1028_vm1, %v1113_v16  ;;  %v1116_v14 = vpack.c.bf16 %v1112_v45, %v1111_v44  ;;  %723 = vmatmul.bf16.gmra.mxu1 %v2377_v34 }
 0x200   : > { %1269 = vmatpush.bf16.msrb.mxu1 %v1673_v9 }
 0x204   : > { %1270 = vmatpush.bf16.msrb.mxu1 %v1672_v54 }
 0x208   : > { %1271 = vmatpush.bf16.msrb.mxu1 %v1671_v48 }
 0x20c   : > { %1272 = vmatpush.bf16.msrb.mxu1 %v1670_v58 }
 0x20f   : > { %1589 = vmatmul.msk.bf16.gmra.mxu2 %vm1028_vm1, %v1114_v46  ;;  %728 = vmatmul.bf16.gmra.mxu1 %v2416_v15 }
 0x210   : > { %1273 = vmatpush.bf16.msrb.mxu1 %v1669_v61 }
 0x214   : > { %1274 = vmatpush.bf16.msrb.mxu1 %v1668_v0 }
 0x218   : > { %1275 = vmatpush.bf16.msrb.mxu1 %v1667_v2 }
 0x21f   : > { %1590 = vmatmul.msk.bf16.gmra.mxu2 %vm1028_vm1, %v1115_v50 }
 0x22f   : > { %1591 = vmatmul.msk.bf16.gmra.mxu2 %vm1028_vm1, %v1116_v14  ;;  %v1219_v14 = vld [vmem:[#allocation11] sm:$0x1] }
 0x23d   : > { %v937_v47 = vpop.f32.mrf.mxu2 }
 0x23e   : > { %v938_v34 = vadd.f32 %v937_v47, %v898_v31 }
 0x245   : > { %v939_v51 = vpop.f32.mrf.mxu2 }
 0x25c   : > { %v714_v29 = vpop.f32.mrf.mxu1 }
 0x25d   : > { %v715_v5 = vadd.f32 %v714_v29, %v569_v1 }
 0x264   : > { %v716_v53 = vpop.f32.mrf.mxu1 }
 0x265   : > { %v717_v17 = vadd.f32 %v716_v53, %v569_v1 }
 0x26c   : > { %v719_v36 = vpop.f32.mrf.mxu1 }
 0x26d   : > { %v720_v18 = vadd.f32 %v719_v36, %v569_v1 }
 0x274   : > { %v721_v59 = vpop.f32.mrf.mxu1 }
 0x275   : > { %v722_v22 = vadd.f32 %v721_v59, %v569_v1 }
 0x27c   : > { %v724_v62 = vpop.f32.mrf.mxu1 }
 0x27d   : > { %v725_v24 = vadd.f32 %v724_v62, %v569_v1 }
 0x280   : > { %v1134_v55 = vpop.f32.mrf.mxu3 }
 0x281   : > { %v1179_v26 = vmul.f32 %v1134_v55, %v938_v34 }
 0x282   : > { %v1159_v15 = vpop.f32.mrf.mxu2 }
 0x283   : > { %v1180_v21 = vmul.f32 %v1159_v15, %v715_v5 }
 0x284   : > { %v726_v40 = vpop.f32.mrf.mxu1 }
 0x285   : > { %v727_v32 = vadd.f32 %v726_v40, %v569_v1 }
 0x288   : > { %v1136_v56 = vpop.f32.mrf.mxu3 }
 0x28a   : > { %v1161_v57 = vpop.f32.mrf.mxu2 }
 0x28b   : > { %v1181_v20 = vmul.f32 %v1161_v57, %v717_v17 }
 0x28c   : > { %v729_v19 = vpop.f32.mrf.mxu1 }
 0x28d   : > { %v1188_v25 = vadd.f32 %v1181_v20, %v1180_v21  ;;  %v730_v39 = vadd.f32 %v729_v19, %v569_v1 }
 0x292   : > { %v1164_v60 = vpop.f32.mrf.mxu2 }
 0x293   : > { %v1182_v23 = vmul.f32 %v1164_v60, %v720_v18 }
 0x294   : > { %v731_v41 = vpop.f32.mrf.mxu1 }
 0x295   : > { %v1189_v30 = vadd.f32 %v1188_v25, %v1182_v23  ;;  %v732_v7 = vadd.f32 %v731_v41, %v569_v1 }
 0x29a   : > { %v1166_v49 = vpop.f32.mrf.mxu2 }
 0x29b   : > { %v1183_v27 = vmul.f32 %v1166_v49, %v722_v22 }
 0x29d   : > { %v1190_v37 = vadd.f32 %v1189_v30, %v1183_v27 }
 0x2a2   : > { %v1169_v63 = vpop.f32.mrf.mxu2 }
 0x2a3   : > { %v1184_v35 = vmul.f32 %v1169_v63, %v725_v24 }
 0x2a5   : > { %v1191_v42 = vadd.f32 %v1190_v37, %v1184_v35 }
 0x2aa   : > { %v1171_v4 = vpop.f32.mrf.mxu2 }
 0x2ab   : > { %v1185_v38 = vmul.f32 %v1171_v4, %v727_v32 }
 0x2ad   : > { %v1192_v6 = vadd.f32 %v1191_v42, %v1185_v38 }
 0x2b2   : > { %v1174_v28 = vpop.f32.mrf.mxu2 }
 0x2b3   : > { %v1186_v3 = vmul.f32 %v1174_v28, %v730_v39 }
 0x2b5   : > { %v1193_v10 = vadd.f32 %v1192_v6, %v1186_v3 }
 0x2ba   : > { %v1176_v8 = vpop.f32.mrf.mxu2 }
 0x2bb   : > { %v1187_v11 = vmul.f32 %v1176_v8, %v732_v7 }
 0x2bd   : > { %v1194_v33 = vadd.f32 %v1193_v10, %v1187_v11 }
 0x2bf   : > { %v1195_v12 = vrot.slane %v1194_v33, 4 }
 0x2c1   : > { %v1196_v13 = vadd.f32 %v1195_v12, %v1194_v33 }
 0x2c3   : > { %v1197_v43 = vrot.slane %v1196_v13, 2 }
 0x2c5   : > { %v1198_v44 = vadd.f32 %v1197_v43, %v1196_v13 }
 0x2c7   : > { %v1199_v16 = vrot.slane %v1198_v44, 1 }
 0x2c9   : > { %v1200_v45 = vadd.f32 %v1199_v16, %v1198_v44 }
 0x2cb   : > { %v1201_v46 = vadd.f32 %v1200_v45, %v1179_v26 }
 0x2cd   : > { %v1202_v50 = vpack.c.bf16 %v1201_v46, %v1201_v46 }
 0x2cf   : > { %1276 = vmatmul.bf16.vlgmr.msrb.gmra.mxu1 %v1202_v50 }
 0x34c   : > { %v1277_v47 = vpop.f32.mrf.mxu1 }
 0x34d   : > { %v1278_v51 = vadd.f32 %v1277_v47, %v1219_v14 }
 0x34f   : > { %1281 = vst [vmem:[%s484_s27] sm:$0x1] %v1278_v51 }
 0x350   : > { %2035 = shalt.err (!%p2032_p9)
}
 0x351   : > { %1724 = dma.vmem_to_hbm [thread:$0]  (%p2249_p13), %s1294_s29, 16, %s1296_s15, %s1283_s2  }
 0x354   : > { %v1279_v52 = vpop.f32.mrf.mxu1 }
 0x355 PF: > { %s1307_s11 = sand.u32 1, %s2074_s17   ;;  %p2651_p10 = scmp.ge.s32.totalorder %s2086_s20, 2 }
 0x356   : > { %s1308_s22 = scalar_lea.sflag [#allocation4], %s1307_s11 }
 0x357   : > { %p1747_p11 = pnand %p2651_p10, %p2254_p5 }
 0x359   : > { %p1748_p0 = pneg %p1747_p11 }
 0x35b   : > { %2069 = dma.done.wait (%p1748_p0), %s1308_s22, 16  }
 0x35c   : > { %2071 = vsyncadd (%p1748_p0), %s1308_s22, 4294967280  ;;  %p27_p2 = scmp.ge.s32.totalorder %s2229_s26, 4   ;;  %s2652_s17 = smov %s2078_s18 }
 0x35d   : > { %s2653_s18 = smov %s2082_s19  ;;  %s2654_s19 = smov %s2241_s13 }
 0x35e   : > { %s2655_s20 = smov %s2229_s26  ;;  %29 = sbr.rel (!%p27_p2) target bundleno = 14 (0xe), region = 129 }
 0x363   :  { %1313 = vsyncpa [#allocation3], 1 }
 0x364   :  { %1315 = vsyncpa [#allocation3 + $0x1], 1 }
 0x365   :  { %1316 = vsyncpa [#allocation6], 1 }
 0x366   :  { %1317 = vsyncpa [#allocation9], 1 }
 0x367   :  { %1318 = vsyncpa [#allocation12], 1 }
 0x368   :  { %1319 = vsyncpa [#allocation4], 1 }
 0x369   :  { %1321 = vsyncpa [#allocation4 + $0x1], 1 }

</bundles_post_ra>
